<compile_context>
chip_gen: v5e
topology: v5e:2x2
jax: 0.10.0
libtpu: 0.0.40
codegen_flags: <defaults>
</compile_context>

<pallas_src>
import math
import functools

import jax
import jax.numpy as jnp
from jax import lax
from jax.experimental import pallas as pl
from jax.experimental.pallas import tpu as pltpu


def _round_up(x, m):
    return ((x + m - 1) // m) * m


def _gelu_exact(x):
    # PyTorch nn.GELU() default = exact erf formulation (kept for parity).
    return 0.5 * x * (1.0 + lax.erf(x * (1.0 / math.sqrt(2.0))))


def adaptive_controller_kernel(
    x_ref,    # (TM, H)   f32  token tile (cast to bf16 in-kernel)
    w1_ref,   # (H, K)    bf16 fused layer-1 weight  [halt || importance || 0-pad]
    b1_ref,   # (1, K)    f32  fused layer-1 bias
    w2_ref,   # (K, P)    bf16 block-diag layer-2 weight (lane-padded)
    b2_ref,   # (1, P)    f32  packed layer-2 bias
    out_ref,  # (TM, P)   f32  col 0: halt prob, cols 1..1+L: importance
    *,
    num_layers,
):
    # bf16 MXU operands; cast here so only f32 x is streamed from HBM once.
    x = x_ref[...].astype(jnp.bfloat16)

    # ---- fused layer 1: one MXU matmul for both heads, f32 accumulate ----
    h1 = jnp.dot(x, w1_ref[...], preferred_element_type=jnp.float32) + b1_ref[...]
    h1 = _gelu_exact(h1)                       # padded cols: gelu(0) = 0

    # ---- fused layer 2: block-diagonal weight -> (TM, P) logits ----
    y = jnp.dot(h1.astype(w2_ref.dtype), w2_ref[...],
                preferred_element_type=jnp.float32) + b2_ref[...]

    tm, p = y.shape
    col = lax.broadcasted_iota(jnp.int32, (tm, p), 1)
    imp_mask = (col >= 1) & (col < 1 + num_layers)

    # masked softmax over the importance columns (full lane width, no slicing)
    masked = jnp.where(imp_mask, y, -jnp.inf)
    m = jnp.max(masked, axis=-1, keepdims=True)
    e = jnp.exp(masked - m)                    # exp(-inf) = 0 on padded cols
    denom = jnp.sum(e, axis=-1, keepdims=True)
    inv = pl.reciprocal(denom, approx=True)    # EUP slot
    inv = inv * (2.0 - denom * inv)            # one Newton step -> ~f32 exact
    soft = e * inv

    # halt probability lives in column 0
    halt = jax.nn.sigmoid(y)                   # EUP; only col 0 is kept
    out = jnp.where(col == 0, halt, soft)      # zeros beyond 1+L columns
    out_ref[...] = out.astype(out_ref.dtype)


def _pick_tile_m(M, bytes_per_row, budget=24 * 2**20):
    """Largest token tile whose double-buffered x+out fit in the VMEM budget."""
    if M <= 2048 and 2 * M * bytes_per_row <= budget:
        return M                                   # single block, no grid loop
    for tm in (2048, 1024, 512, 256, 128, 64, 32, 16, 8):
        if 2 * tm * bytes_per_row <= budget:
            return min(tm, M)
    return 8


@functools.partial(jax.jit, static_argnames=("num_layers",))
def adaptive_controller_forward(hidden_states, packed, *, num_layers):
    """hidden_states: (B, S, H) f32. Returns (halt_prob, importance_scores, metrics)."""
    B, S, H = hidden_states.shape
    L = num_layers
    M = B * S
    K = packed["w1"].shape[1]          # lane-padded fused layer-1 width
    P = packed["w2"].shape[1]          # lane-padded output width

    x2d = hidden_states.reshape(M, H)  # metadata-only reshape, stays f32

    bytes_per_row = H * 4 + P * 4      # streamed x (f32) + out (f32) per token
    TM = _pick_tile_m(M, bytes_per_row)
    grid_m = pl.cdiv(M, TM)

    # VMEM budget: double-buffered x/out tiles + resident weights/biases.
    need = (2 * TM * H * 4) + (2 * TM * P * 4) \
        + (H * K * 2) + (K * P * 2) + (K + P) * 4
    vmem_limit = int(min(48 * 2**20, max(8 * 2**20, int(1.5 * need))))

    cost = pl.CostEstimate(
        flops=2 * M * H * K + 2 * M * K * P,
        transcendentals=M * (K + 2 * P),
        bytes_accessed=M * (H + P) * 4 + (H * K + K * P) * 2 + (K + P) * 4,
    )

    kernel = functools.partial(adaptive_controller_kernel, num_layers=L)

    out2d = pl.pallas_call(
        kernel,
        out_shape=jax.ShapeDtypeStruct((M, P), jnp.float32),
        grid=(grid_m,),
        in_specs=[
            pl.BlockSpec((TM, H), lambda i: (i, 0)),       # streamed x tiles
            pl.BlockSpec((H, K), lambda i: (0, 0)),        # resident weights
            pl.BlockSpec((1, K), lambda i: (0, 0)),
            pl.BlockSpec((K, P), lambda i: (0, 0)),
            pl.BlockSpec((1, P), lambda i: (0, 0)),
        ],
        out_specs=pl.BlockSpec((TM, P), lambda i: (i, 0)),  # lane-dense slab
        compiler_params=pltpu.CompilerParams(
            dimension_semantics=("parallel",),
            vmem_limit_bytes=vmem_limit,
        ),
        cost_estimate=cost,
    )(x2d, packed["w1"], packed["b1"], packed["w2"], packed["b2"])

    halt_prob = out2d[:, 0:1].reshape(B, S, 1)
    importance_scores = out2d[:, 1:1 + L].reshape(B, S, L)

    # budget_per_token = ones(B, S) — trivial, kept in plain JAX
    budget_per_token = jnp.ones((B, S), dtype=jnp.float32)

    # Device arrays (no host sync / .item()) so the wrapper stays jittable.
    metrics = {
        "halt_prob": jnp.mean(halt_prob),
        "importance_scores": jnp.mean(importance_scores, axis=(0, 1)),
        "remaining_budget": jnp.mean(budget_per_token),
    }
    return halt_prob, importance_scores, metrics


def init_params(key, hidden_size, num_layers):
    """Deterministic init mirroring nn.Linear shapes (weights stored (in, out))."""
    H, H2, L = hidden_size, hidden_size // 2, num_layers
    ks = jax.random.split(key, 8)

    def linear(kw, kb, fan_in, fan_out):
        bound = 1.0 / math.sqrt(fan_in)
        w = jax.random.uniform(kw, (fan_in, fan_out), jnp.float32, -bound, bound)
        b = jax.random.uniform(kb, (1, fan_out), jnp.float32, -bound, bound)
        return w, b

    w1h, b1h = linear(ks[0], ks[1], H, H2)
    w2h, b2h = linear(ks[2], ks[3], H2, 1)
    w1i, b1i = linear(ks[4], ks[5], H, H2)
    w2i, b2i = linear(ks[6], ks[7], H2, L)
    return {
        "w1h": w1h, "b1h": b1h, "w2h": w2h, "b2h": b2h,
        "w1i": w1i, "b1i": b1i, "w2i": w2i, "b2i": b2i,
    }


def pack_params(params, hidden_size, num_layers):
    """Fuse the two heads into one matmul per layer with lane-padded widths."""
    H = hidden_size
    H2 = H // 2
    L = num_layers
    K = max(128, _round_up(2 * H2, 128))   # padded fused layer-1 output width
    P = max(128, _round_up(1 + L, 128))    # padded layer-2 output width

    w1 = jnp.zeros((H, K), jnp.float32)
    w1 = w1.at[:, :H2].set(params["w1h"])                 # halt head
    w1 = w1.at[:, H2:2 * H2].set(params["w1i"])           # importance head
    b1 = jnp.zeros((1, K), jnp.float32)
    b1 = b1.at[:, :H2].set(params["b1h"])
    b1 = b1.at[:, H2:2 * H2].set(params["b1i"])

    w2 = jnp.zeros((K, P), jnp.float32)
    w2 = w2.at[:H2, 0:1].set(params["w2h"])               # halt -> column 0
    w2 = w2.at[H2:2 * H2, 1:1 + L].set(params["w2i"])     # importance -> 1..1+L
    b2 = jnp.zeros((1, P), jnp.float32)
    b2 = b2.at[:, 0:1].set(params["b2h"])
    b2 = b2.at[:, 1:1 + L].set(params["b2i"])

    return {
        "w1": w1.astype(jnp.bfloat16),   # MXU operands in bf16
        "b1": b1,                        # biases stay f32 (added post-accumulate)
        "w2": w2.astype(jnp.bfloat16),
        "b2": b2,
    }


def _reference_forward(hidden_states, params, num_layers):
    """Pure-JAX f32 reference for a sanity check."""
    x = hidden_states
    h = _gelu_exact(x @ params["w1h"] + params["b1h"])
    halt = jax.nn.sigmoid(h @ params["w2h"] + params["b2h"])
    g = _gelu_exact(x @ params["w1i"] + params["b1i"])
    imp = jax.nn.softmax(g @ params["w2i"] + params["b2i"], axis=-1)
    return halt, imp


if __name__ == "__main__":
    B, S, H, L = 2, 8, 32, 4  # batch, seq, hidden_size, num_layers

    key = jax.random.PRNGKey(0)
    k_x, k_p = jax.random.split(key)
    hidden_states = jax.random.normal(k_x, (B, S, H), dtype=jnp.float32)
    params = init_params(k_p, H, L)
    packed = pack_params(params, H, L)

    halt_prob, importance_scores, metrics = adaptive_controller_forward(
        hidden_states, packed, num_layers=L)
    jax.block_until_ready((halt_prob, importance_scores))

    # sanity: shapes, ranges, softmax normalization
    assert halt_prob.shape == (B, S, 1)
    assert importance_scores.shape == (B, S, L)
    assert bool(jnp.all((halt_prob >= 0) & (halt_prob <= 1)))
    assert bool(jnp.allclose(jnp.sum(importance_scores, axis=-1), 1.0, atol=1e-4))

    # loose comparison vs. f32 reference (kernel uses bf16 MXU operands)
    ref_halt, ref_imp = _reference_forward(hidden_states, params, L)
    assert bool(jnp.allclose(halt_prob, ref_halt, atol=3e-2))
    assert bool(jnp.allclose(importance_scores, ref_imp, atol=3e-2))

    print("KERNEL_OK")
</pallas_src>

<mosaic_0001>
module attributes {stable_mosaic.version = 11 : i64} {
  func.func @adaptive_controller_kernel(%arg0: i32, %arg1: memref<16x32xf32, #tpu.memory_space<vmem>>, %arg2: memref<32x128xbf16, #tpu.memory_space<vmem>>, %arg3: memref<1x128xf32, #tpu.memory_space<vmem>>, %arg4: memref<128x128xbf16, #tpu.memory_space<vmem>>, %arg5: memref<1x128xf32, #tpu.memory_space<vmem>>, %arg6: memref<16x128xf32, #tpu.memory_space<vmem>>) attributes {dimension_semantics = [#tpu.dimension_semantics<parallel>], iteration_bounds = array<i64: 1>, scalar_prefetch = 0 : i64, scratch_operands = 0 : i64, tpu.core_type = #tpu.core_type<tc>, window_params = [{transform_indices = @transform_0, window_bounds = array<i64: 16, 32>}, {pipeline_mode = #tpu.pipeline_mode<synchronous>, transform_indices = @transform_1, window_bounds = array<i64: 32, 128>}, {pipeline_mode = #tpu.pipeline_mode<synchronous>, transform_indices = @transform_2, window_bounds = array<i64: 1, 128>}, {pipeline_mode = #tpu.pipeline_mode<synchronous>, transform_indices = @transform_3, window_bounds = array<i64: 128, 128>}, {pipeline_mode = #tpu.pipeline_mode<synchronous>, transform_indices = @transform_4, window_bounds = array<i64: 1, 128>}, {transform_indices = @transform_5, window_bounds = array<i64: 16, 128>}]} {
    %c0 = arith.constant 0 : index
    %c0_0 = arith.constant 0 : index
    %0 = vector.load %arg1[%c0, %c0_0] : memref<16x32xf32, #tpu.memory_space<vmem>>, vector<16x32xf32>
    %1 = arith.truncf %0 : vector<16x32xf32> to vector<16x32xbf16>
    %c0_1 = arith.constant 0 : index
    %c0_2 = arith.constant 0 : index
    %2 = vector.load %arg2[%c0_1, %c0_2] : memref<32x128xbf16, #tpu.memory_space<vmem>>, vector<32x128xbf16>
    %cst = arith.constant dense<0.000000e+00> : vector<16x128xf32>
    %3 = tpu.matmul %1, %2, %cst {dimension_numbers = #tpu.dot_dimension_numbers<[1], [0], [0], [1], [0, 0, 1, 1], [], []>} : vector<16x32xbf16>, vector<32x128xbf16>, vector<16x128xf32> -> vector<16x128xf32>
    %c0_3 = arith.constant 0 : index
    %c0_4 = arith.constant 0 : index
    %4 = vector.load %arg3[%c0_3, %c0_4] : memref<1x128xf32, #tpu.memory_space<vmem>>, vector<1x128xf32>
    %5 = vector.broadcast %4 : vector<1x128xf32> to vector<16x128xf32>
    %6 = arith.addf %3, %5 : vector<16x128xf32>
    %cst_5 = arith.constant 5.000000e-01 : f32
    %7 = vector.broadcast %cst_5 : f32 to vector<16x128xf32>
    %8 = arith.mulf %7, %6 : vector<16x128xf32>
    %cst_6 = arith.constant 0.707106769 : f32
    %9 = vector.broadcast %cst_6 : f32 to vector<16x128xf32>
    %10 = arith.mulf %6, %9 : vector<16x128xf32>
    %11 = math.erf %10 : vector<16x128xf32>
    %cst_7 = arith.constant 1.000000e+00 : f32
    %12 = vector.broadcast %cst_7 : f32 to vector<16x128xf32>
    %13 = arith.addf %12, %11 : vector<16x128xf32>
    %14 = arith.mulf %8, %13 : vector<16x128xf32>
    %15 = arith.truncf %14 : vector<16x128xf32> to vector<16x128xbf16>
    %c0_8 = arith.constant 0 : index
    %c0_9 = arith.constant 0 : index
    %16 = vector.load %arg4[%c0_8, %c0_9] : memref<128x128xbf16, #tpu.memory_space<vmem>>, vector<128x128xbf16>
    %cst_10 = arith.constant dense<0.000000e+00> : vector<16x128xf32>
    %17 = tpu.matmul %15, %16, %cst_10 {dimension_numbers = #tpu.dot_dimension_numbers<[1], [0], [0], [1], [0, 0, 1, 1], [], []>} : vector<16x128xbf16>, vector<128x128xbf16>, vector<16x128xf32> -> vector<16x128xf32>
    %c0_11 = arith.constant 0 : index
    %c0_12 = arith.constant 0 : index
    %18 = vector.load %arg5[%c0_11, %c0_12] : memref<1x128xf32, #tpu.memory_space<vmem>>, vector<1x128xf32>
    %19 = vector.broadcast %18 : vector<1x128xf32> to vector<16x128xf32>
    %20 = arith.addf %17, %19 : vector<16x128xf32>
    %21 = tpu.iota {dimensions = array<i32: 1>} : vector<16x128xi32>
    %c1_i32 = arith.constant 1 : i32
    %22 = vector.broadcast %c1_i32 : i32 to vector<16x128xi32>
    %23 = arith.cmpi sge, %21, %22 : vector<16x128xi32>
    %c5_i32 = arith.constant 5 : i32
    %24 = vector.broadcast %c5_i32 : i32 to vector<16x128xi32>
    %25 = arith.cmpi slt, %21, %24 : vector<16x128xi32>
    %26 = arith.andi %23, %25 : vector<16x128xi1>
    %cst_13 = arith.constant 0xFF800000 : f32
    %27 = vector.broadcast %cst_13 : f32 to vector<16x128xf32>
    %28 = arith.select %26, %20, %27 : vector<16x128xi1>, vector<16x128xf32>
    %cst_14 = arith.constant dense<0xFF800000> : vector<16xf32>
    %29 = vector.multi_reduction <maximumf>, %28, %cst_14 [1] : vector<16x128xf32> to vector<16xf32>
    %30 = vector.shape_cast %29 : vector<16xf32> to vector<16x1xf32>
    %31 = vector.broadcast %30 : vector<16x1xf32> to vector<16x128xf32>
    %32 = arith.subf %28, %31 : vector<16x128xf32>
    %33 = math.exp %32 : vector<16x128xf32>
    %cst_15 = arith.constant dense<0.000000e+00> : vector<16xf32>
    %34 = vector.multi_reduction <add>, %33, %cst_15 [1] : vector<16x128xf32> to vector<16xf32>
    %35 = vector.shape_cast %34 : vector<16xf32> to vector<16x1xf32>
    %36 = tpu.reciprocal %35 {approx = true} : vector<16x1xf32> -> vector<16x1xf32>
    %37 = arith.mulf %35, %36 : vector<16x1xf32>
    %cst_16 = arith.constant 2.000000e+00 : f32
    %38 = vector.broadcast %cst_16 : f32 to vector<16x1xf32>
    %39 = arith.subf %38, %37 : vector<16x1xf32>
    %40 = arith.mulf %36, %39 : vector<16x1xf32>
    %41 = vector.broadcast %40 : vector<16x1xf32> to vector<16x128xf32>
    %42 = arith.mulf %33, %41 : vector<16x128xf32>
    %43 = arith.negf %20 : vector<16x128xf32>
    %44 = math.exp %43 : vector<16x128xf32>
    %cst_17 = arith.constant 1.000000e+00 : f32
    %45 = vector.broadcast %cst_17 : f32 to vector<16x128xf32>
    %46 = arith.addf %45, %44 : vector<16x128xf32>
    %47 = arith.divf %45, %46 : vector<16x128xf32>
    %c0_i32 = arith.constant 0 : i32
    %48 = vector.broadcast %c0_i32 : i32 to vector<16x128xi32>
    %49 = arith.cmpi eq, %21, %48 : vector<16x128xi32>
    %50 = arith.select %49, %47, %42 : vector<16x128xi1>, vector<16x128xf32>
    %c0_18 = arith.constant 0 : index
    %c0_19 = arith.constant 0 : index
    %51 = vector.load %arg6[%c0_18, %c0_19] : memref<16x128xf32, #tpu.memory_space<vmem>>, vector<16x128xf32>
    tpu.vector_store %arg6[%c0_18, %c0_19], %50 {strides = array<i32>} : memref<16x128xf32, #tpu.memory_space<vmem>>, vector<16x128xf32>,
    return
  }
  func.func @transform_0(%arg0: i32) -> (i32, i32) {
    %c0_i32 = arith.constant 0 : i32
    %c0_i32_0 = arith.constant 0 : i32
    return %arg0, %c0_i32 : i32, i32
  }
  func.func @transform_1(%arg0: i32) -> (i32, i32) {
    %c0_i32 = arith.constant 0 : i32
    %c0_i32_0 = arith.constant 0 : i32
    %c0_i32_1 = arith.constant 0 : i32
    return %c0_i32, %c0_i32_0 : i32, i32
  }
  func.func @transform_2(%arg0: i32) -> (i32, i32) {
    %c0_i32 = arith.constant 0 : i32
    %c0_i32_0 = arith.constant 0 : i32
    %c0_i32_1 = arith.constant 0 : i32
    return %c0_i32, %c0_i32_0 : i32, i32
  }
  func.func @transform_3(%arg0: i32) -> (i32, i32) {
    %c0_i32 = arith.constant 0 : i32
    %c0_i32_0 = arith.constant 0 : i32
    %c0_i32_1 = arith.constant 0 : i32
    return %c0_i32, %c0_i32_0 : i32, i32
  }
  func.func @transform_4(%arg0: i32) -> (i32, i32) {
    %c0_i32 = arith.constant 0 : i32
    %c0_i32_0 = arith.constant 0 : i32
    %c0_i32_1 = arith.constant 0 : i32
    return %c0_i32, %c0_i32_0 : i32, i32
  }
  func.func @transform_5(%arg0: i32) -> (i32, i32) {
    %c0_i32 = arith.constant 0 : i32
    %c0_i32_0 = arith.constant 0 : i32
    return %arg0, %c0_i32 : i32, i32
  }
}

</mosaic_0001>

<bundles_post_ra>
// kernel: adaptive_controller_forward.1
= control target key start
LH: loop header
LB: loop body
LE: loop exit
PB: predicated region body
PF: predicated region fallthrough
CT: control target
= control target key end

     0   :  { %10 = vsyncpa [#allocation3], 0  ;;  %s605_s0 = inlined_call_operand.hbm [shape: f32[16,32], index: 0, kind: input, shape index: {}]   ;;  %s606_s1 = inlined_call_operand.hbm [shape: bf16[32,128], index: 1, kind: input, shape index: {}]   ;;  %s607_s2 = inlined_call_operand.vmem [shape: f32[1,128], index: 2, kind: input, shape index: {}]   ;;  %s608_s3 = inlined_call_operand.hbm [shape: bf16[128,128], index: 3, kind: input, shape index: {}]   ;;  %s609_s4 = inlined_call_operand.vmem [shape: f32[1,128], index: 4, kind: input, shape index: {}]   ;;  %s610_s5 = inlined_call_operand.vmem [shape: f32[16,128], index: 5, kind: output, shape index: {}]  }
   0x1   :  { %11 = vsyncpa [#allocation5], 0  ;;  %s29_s20 = sshll.u32 %s606_s1, 4  ;;  %s520_s21 = smov [#allocation4]   ;;  %s30_s20 = int_to_ptr.hbm [resolvable:$true] %s29_s20 }
   0x2   :  { %s31_s22 = sshll.u32 %s520_s21, 4  ;;  %s16_s25 = sshll.u32 %s605_s0, 4  ;;  %s32_s22 = int_to_ptr.vmem [resolvable:$true] %s31_s22  ;;  %s17_s25 = int_to_ptr.hbm [resolvable:$true] %s16_s25 }
   0x3   :  { %s521_s26 = smov 64   ;;  %s522_s27 = smov 4  }
   0x4   :  { %37 = dma.hbm_to_vmem [thread:$0]  %s30_s20, 256, %s32_s22, [#allocation5], %s521_s26, %s521_s26, %s522_s27  }
   0x5   :  { %s523_s28 = smov [#allocation2]   ;;  %s524_s30 = smov 128  }
   0x6   :  { %s18_s29 = sshll.u32 %s523_s28, 4  ;;  %s525_s6 = smov 8   ;;  %s19_s29 = int_to_ptr.vmem [resolvable:$true] %s18_s29 }
   0x7   :  { %24 = dma.hbm_to_vmem [thread:$0]  %s17_s25, 256, %s19_s29, [#allocation3], %s524_s30, %s524_s30, %s525_s6  }
   0x8   :  { %s44_s8 = sshll.u32 %s608_s3, 4  ;;  %s526_s9 = smov [#allocation6]   ;;  %s45_s8 = int_to_ptr.hbm [resolvable:$true] %s44_s8 }
   0x9   :  { %s46_s10 = sshll.u32 %s526_s9, 4  ;;  %s47_s10 = int_to_ptr.vmem [resolvable:$true] %s46_s10 }
   0xa   :  { %52 = dma.hbm_to_vmem [thread:$0]  %s45_s8, 1024, %s47_s10, [#allocation5], %s521_s26, %s521_s26, %s522_s27  }
   0xb   :  { %516 = dma.done.wait [#allocation3], 256  }
   0xc   :  { %517 = vsyncadd [#allocation3], 4294967040 }
   0xd   :  { %518 = dma.done.wait [#allocation5], 1280  }
   0xe   :  { %519 = vsyncadd [#allocation5], 4294966016  ;;  %v406_v0 = vld [vmem:[#allocation4 + $0x8] sm:$0xff]  ;;  %v405_v1 = vld [vmem:[#allocation4] sm:$0xff]  ;;  %vm91_vm0 = vcmask 261120  }
   0xf   :  { %101 = vmatpush.bf16.msra.mxu0 %v406_v0  ;;  %v68_v2 = vld [vmem:[#allocation2] sm:$0xff]  ;;  %v69_v3 = vld [vmem:[#allocation2 + $0x8] sm:$0xff]  ;;  %v414_v6 = vld [vmem:[#allocation6 + $0x38] sm:$0xff] }
  0x10   :  { %v70_v4 = vpack.c.bf16 %v69_v3, %v68_v2  ;;  %v422_v5 = vld [vmem:[%s607_s2] ss:$0 sm:$0xff]  ;;  %266 = vmatpush.bf16.msra.mxu1 %v414_v6  ;;  %v413_v10 = vld [vmem:[#allocation6 + $0x30] sm:$0xff]  ;;  %v412_v12 = vld [vmem:[#allocation6 + $0x28] sm:$0xff] }
  0x11   :  { %v411_v17 = vld [vmem:[#allocation6 + $0x20] sm:$0xff]  ;;  %v410_v23 = vld [vmem:[#allocation6 + $0x18] sm:$0xff]  ;;  %v409_v29 = vld [vmem:[#allocation6 + $0x10] sm:$0xff] }
  0x12   :  { %v408_v37 = vld [vmem:[#allocation6 + $0x8] sm:$0xff]  ;;  %v407_v44 = vld [vmem:[#allocation6] sm:$0xff] }
  0x13   :  { %102 = vmatpush.bf16.msra.mxu0 %v405_v1 }
  0x14   :  { %267 = vmatpush.bf16.msra.mxu1 %v413_v10 }
  0x16   :  { %368 = vmatmul.msk.bf16.vlgmr.msra.gmra.mxu0 %vm91_vm0, %v70_v4 }
  0x18   :  { %268 = vmatpush.bf16.msra.mxu1 %v412_v12 }
  0x1c   :  { %269 = vmatpush.bf16.msra.mxu1 %v411_v17 }
  0x20   :  { %270 = vmatpush.bf16.msra.mxu1 %v410_v23 }
  0x24   :  { %271 = vmatpush.bf16.msra.mxu1 %v409_v29 }
  0x28   :  { %272 = vmatpush.bf16.msra.mxu1 %v408_v37 }
  0x2c   :  { %273 = vmatpush.bf16.msra.mxu1 %v407_v44 }
  0x93   :  { %v104_v7 = vpop.f32.mrf.mxu0 }
  0x94   :  { %v569_v8 = vadd.f32 %v422_v5, %v104_v7 }
  0x96   :  { %v572_v9 = vmul.f32 0.70710677, %v569_v8 }
  0x98   :  { %v113_v11 = vmul.f32 %v572_v9, %v572_v9 }
  0x9a   :  { %v114_v13 = vmin.f32 %v113_v11, 16.0 }
  0x9b   :  { %v106_v14 = vpop.f32.mrf.mxu0 }
  0x9c   :  { %v115_v15 = vmul.f32 2.1237322e-06, %v114_v13  ;;  %v576_v16 = vadd.f32 %v422_v5, %v106_v14  ;;  %v126_v18 = vmul.f32 3.8918573e-05, %v114_v13 }
  0x9e   :  { %v116_v19 = vadd.f32 0.00028619796, %v115_v15  ;;  %v579_v20 = vmul.f32 0.70710677, %v576_v16  ;;  %v127_v21 = vadd.f32 0.001143296, %v126_v18 }
  0xa0   :  { %v153_v22 = vmul.f32 %v579_v20, %v579_v20  ;;  %v117_v24 = vmul.f32 %v116_v19, %v114_v13  ;;  %v128_v25 = vmul.f32 %v127_v21, %v114_v13 }
  0xa2   :  { %v154_v26 = vmin.f32 %v153_v22, 16.0  ;;  %v129_v27 = vadd.f32 0.014752088, %v128_v25  ;;  %v118_v31 = vadd.f32 0.0036580483, %v117_v24 }
  0xa4   :  { %v155_v28 = vmul.f32 2.1237322e-06, %v154_v26  ;;  %v166_v30 = vmul.f32 3.8918573e-05, %v154_v26  ;;  %v130_v32 = vmul.f32 %v129_v27, %v114_v13  ;;  %v119_v39 = vmul.f32 %v118_v31, %v114_v13 }
  0xa5   :  { %v110_v31 = vmul.f32 0.5, %v576_v16 }
  0xa6   :  { %v156_v33 = vadd.f32 0.00028619796, %v155_v28  ;;  %v167_v34 = vadd.f32 0.001143296, %v166_v30  ;;  %v131_v35 = vadd.f32 0.112945676, %v130_v32 }
  0xa7   :  { %v120_v46 = vadd.f32 0.05243302, %v119_v39  ;;  %v109_v30 = vmul.f32 0.5, %v569_v8 }
  0xa8   :  { %v157_v36 = vmul.f32 %v156_v33, %v154_v26  ;;  %v168_v38 = vmul.f32 %v167_v34, %v154_v26  ;;  %v132_v40 = vmul.f32 %v131_v35, %v114_v13 }
  0xa9   :  { %v121_v52 = vmul.f32 %v120_v46, %v114_v13 }
  0xaa   :  { %v158_v41 = vadd.f32 0.0036580483, %v157_v36  ;;  %v169_v42 = vadd.f32 0.014752088, %v168_v38  ;;  %v133_v43 = vadd.f32 0.4994258, %v132_v40  ;;  %v280_v36 = vlaneseq }
  0xab   :  { %v122_v56 = vadd.f32 0.18741608, %v121_v52 }
  0xac   :  { %v170_v45 = vmul.f32 %v169_v42, %v154_v26  ;;  %v134_v47 = vmul.f32 %v133_v43, %v114_v13  ;;  %v159_v48 = vmul.f32 %v158_v41, %v154_v26  ;;  %v587_v37 = vand.u32 127, %v280_v36 }
  0xad   :  { %v123_v61 = vmul.f32 %v122_v56, %v114_v13 }
  0xae   :  { %v171_v49 = vadd.f32 0.112945676, %v170_v45  ;;  %v135_v50 = vadd.f32 1.0, %v134_v47  ;;  %v160_v53 = vadd.f32 0.05243302, %v159_v48  ;;  %vm282_vm9 = vcmp.ge.s32.totalorder %v587_v37, 1 }
  0xaf   :  { %v124_v3 = vadd.f32 1.1283791, %v123_v61  ;;  %vm283_vm10 = vcmp.lt.s32.totalorder %v587_v37, 5  ;;  %vm349_vm15 = vcmp.eq.s32.totalorder %v587_v37, 0 }
  0xb0   :  { %v172_v51 = vmul.f32 %v171_v49, %v154_v26  ;;  %424 = vrcp.f32 %v135_v50  ;;  %v161_v57 = vmul.f32 %v160_v53, %v154_v26  ;;  %v147_v0 = vand.u32 2147483648, %v135_v50  ;;  %vm284_vm11 = vmand %vm282_vm9, %vm283_vm10 }
  0xb1   :  { %v145_v2 = vand.u32 2147483647, %v135_v50  ;;  %vm141_vm2 = vweird.f32 %v135_v50  ;;  %v125_v12 = vmul.f32 %v124_v3, %v572_v9 }
  0xb2   :  { %v173_v54 = vadd.f32 0.4994258, %v172_v51  ;;  %v162_v62 = vadd.f32 0.18741608, %v161_v57  ;;  %v148_v7 = vor.u32 1.1754944e-38, %v147_v0 }
  0xb3   :  { %vm146_vm4 = vcmp.eq.f32.partialorder %v145_v2, 8.507059e+37 }
  0xb4   :  { %v174_v55 = vmul.f32 %v173_v54, %v154_v26  ;;  %v163_v5 = vmul.f32 %v162_v62, %v154_v26 }
  0xb6   :  { %v175_v58 = vadd.f32 1.0, %v174_v55  ;;  %v425_v59 = vpop.eup %424  ;;  %v164_v15 = vadd.f32 1.1283791, %v163_v5 }
  0xb7   :  { %v137_v60 = vmul.f32 %v425_v59, %v135_v50  ;;  %vm142_vm1 = vweird.f32 %v425_v59 }
  0xb8   :  { %426 = vrcp.f32 %v175_v58  ;;  %vm143_vm3 = vmor %vm141_vm2, %vm142_vm1  ;;  %v187_v17 = vand.u32 2147483648, %v175_v58  ;;  %v185_v21 = vand.u32 2147483647, %v175_v58  ;;  %vm181_vm6 = vweird.f32 %v175_v58 }
  0xb9   :  { %v138_v63 = vsub.f32 1.0, %v137_v60  ;;  %v165_v24 = vmul.f32 %v164_v15, %v579_v20  ;;  %v423_v20 = vld [vmem:[%s609_s4] ss:$0 sm:$0xff] }
  0xba   :  { %v188_v23 = vor.u32 1.1754944e-38, %v187_v17  ;;  %vm186_vm8 = vcmp.eq.f32.partialorder %v185_v21, 8.507059e+37 }
  0xbb   :  { %v139_v1 = vmul.f32 %v425_v59, %v138_v63 }
  0xbd   :  { %v140_v6 = vadd.f32 %v425_v59, %v139_v1 }
  0xbe   :  { %v427_v4 = vpop.eup %426 }
  0xbf   :  { %v177_v10 = vmul.f32 %v427_v4, %v175_v58  ;;  %v144_v11 = vsel %vm143_vm3, %v425_v59, %v140_v6  ;;  %vm182_vm5 = vweird.f32 %v427_v4 }
  0xc0   :  { %v149_v14 = vsel %vm146_vm4, %v148_v7, %v144_v11  ;;  %vm183_vm7 = vmor %vm181_vm6, %vm182_vm5 }
  0xc1   :  { %v178_v13 = vsub.f32 1.0, %v177_v10  ;;  %v150_v18 = vmul.f32 %v149_v14, %v125_v12 }
  0xc3   :  { %v179_v19 = vmul.f32 %v427_v4, %v178_v13  ;;  %v369_v25 = vclamps-f32 %v150_v18, 1.0 }
  0xc5   :  { %v180_v22 = vadd.f32 %v427_v4, %v179_v19  ;;  %v193_v29 = vadd.f32 1.0, %v369_v25 }
  0xc7   :  { %v184_v26 = vsel %vm183_vm7, %v427_v4, %v180_v22  ;;  %v195_v33 = vmul.f32 %v193_v29, %v109_v30 }
  0xc8   :  { %v189_v27 = vsel %vm186_vm8, %v188_v23, %v184_v26 }
  0xc9   :  { %v190_v28 = vmul.f32 %v189_v27, %v165_v24 }
  0xcb   :  { %v370_v9 = vclamps-f32 %v190_v28, 1.0 }
  0xcd   :  { %v194_v32 = vadd.f32 1.0, %v370_v9 }
  0xcf   :  { %v196_v34 = vmul.f32 %v194_v32, %v110_v31 }
  0xd1   :  { %v197_v35 = vpack.c.bf16 %v196_v34, %v195_v33 }
  0xd3   :  { %274 = vmatmul.bf16.vlgmr.msra.gmra.mxu1 %v197_v35 }
 0x150   :  { %v275_v38 = vpop.f32.mrf.mxu1 }
 0x151   :  { %v276_v8 = vadd.f32 %v423_v20, %v275_v38 }
 0x153   :  { %v285_v16 = vsel %vm284_vm11, %v276_v8, -inf  ;;  %v403_v50 = vmul.f32 -1.442695, %v276_v8 }
 0x154   :  { %287 = vmax.xlane.f32.xlu0 %v285_v16 }
 0x158   :  { %v277_v39 = vpop.f32.mrf.mxu1 }
 0x159   :  { %v278_v40 = vadd.f32 %v423_v20, %v277_v39 }
 0x15b   :  { %v286_v41 = vsel %vm284_vm11, %v278_v40, -inf  ;;  %v404_v51 = vmul.f32 -1.442695, %v278_v40 }
 0x15c   :  { %289 = vmax.xlane.f32.xlu0 %v286_v41 }
 0x1c7   :  { %v288_v42 = vpop.xlane.xlu0 %287 }
 0x1c8   :  { %v291_v43 = vsub.f32 %v285_v16, %v288_v42 }
 0x1ca   :  { %v293_v44 = vmul.f32 1.442695, %v291_v43 }
 0x1cc   :  { %428 = vpow2.f32 %v293_v44 }
 0x1cf   :  { %v290_v45 = vpop.xlane.xlu0 %289 }
 0x1d0   :  { %v292_v46 = vsub.f32 %v286_v41, %v290_v45 }
 0x1d2   :  { %v429_v47 = vpop.eup %428  ;;  %v295_v48 = vmul.f32 1.442695, %v292_v46 }
 0x1d3   :  { %297 = vadd.xlane.f32.xlu1 %v429_v47 }
 0x1d4   :  { %430 = vpow2.f32 %v295_v48 }
 0x1d5   :  { %432 = vpow2.f32 %v403_v50 }
 0x1d6   :  { %434 = vpow2.f32 %v404_v51 }
 0x1da   :  { %v431_v49 = vpop.eup %430 }
 0x1db   :  { %299 = vadd.xlane.f32.xlu1 %v431_v49  ;;  %v433_v52 = vpop.eup %432 }
 0x1dc   :  { %v317_v53 = vadd.f32 1.0, %v433_v52  ;;  %v435_v54 = vpop.eup %434 }
 0x1dd   :  { %v318_v55 = vadd.f32 1.0, %v435_v54 }
 0x1de   :  { %436 = vrcp.f32 %v317_v53  ;;  %v330_v4 = vand.u32 2147483648, %v317_v53  ;;  %vm324_vm13 = vweird.f32 %v317_v53  ;;  %v328_v5 = vand.u32 2147483647, %v317_v53 }
 0x1df   :  { %438 = vrcp.f32 %v318_v55  ;;  %v345_v21 = vand.u32 2147483648, %v318_v55  ;;  %vm339_vm2 = vweird.f32 %v318_v55  ;;  %v343_v22 = vand.u32 2147483647, %v318_v55 }
 0x1e0   :  { %v331_v12 = vor.u32 1.1754944e-38, %v330_v4  ;;  %vm329_vm0 = vcmp.eq.f32.partialorder %v328_v5, 8.507059e+37 }
 0x1e1   :  { %v346_v26 = vor.u32 1.1754944e-38, %v345_v21  ;;  %vm344_vm4 = vcmp.eq.f32.partialorder %v343_v22, 8.507059e+37 }
 0x1e4   :  { %v437_v56 = vpop.eup %436 }
 0x1e5   :  { %v320_v57 = vmul.f32 %v437_v56, %v317_v53  ;;  %v439_v60 = vpop.eup %438  ;;  %vm325_vm12 = vweird.f32 %v437_v56 }
 0x1e6   :  { %v335_v62 = vmul.f32 %v439_v60, %v318_v55  ;;  %vm326_vm14 = vmor %vm324_vm13, %vm325_vm12  ;;  %vm340_vm1 = vweird.f32 %v439_v60 }
 0x1e7   :  { %v321_v58 = vsub.f32 1.0, %v320_v57  ;;  %vm341_vm3 = vmor %vm339_vm2, %vm340_vm1 }
 0x1e8   :  { %v336_v0 = vsub.f32 1.0, %v335_v62 }
 0x1e9   :  { %v322_v61 = vmul.f32 %v437_v56, %v321_v58 }
 0x1ea   :  { %v337_v7 = vmul.f32 %v439_v60, %v336_v0 }
 0x1eb   :  { %v323_v1 = vadd.f32 %v437_v56, %v322_v61 }
 0x1ec   :  { %v338_v18 = vadd.f32 %v439_v60, %v337_v7 }
 0x1ed   :  { %v327_v10 = vsel %vm326_vm14, %v437_v56, %v323_v1 }
 0x1ee   :  { %v332_v15 = vsel %vm329_vm0, %v331_v12, %v327_v10  ;;  %v342_v24 = vsel %vm341_vm3, %v439_v60, %v338_v18 }
 0x1ef   :  { %v347_v28 = vsel %vm344_vm4, %v346_v26, %v342_v24 }
 0x246   :  { %v298_v59 = vpop.xlane.xlu1 %297 }
 0x247   :  { %440 = vrcp.f32 %v298_v59 }
 0x24d   :  { %v441_v63 = vpop.eup %440 }
 0x24e   :  { %v303_v2 = vmul.f32 %v441_v63, %v298_v59  ;;  %v300_v3 = vpop.xlane.xlu1 %299 }
 0x24f   :  { %442 = vrcp.f32 %v300_v3 }
 0x250   :  { %v305_v6 = vsub.f32 2.0, %v303_v2 }
 0x252   :  { %v307_v11 = vmul.f32 %v441_v63, %v305_v6 }
 0x254   :  { %v309_v14 = vmul.f32 %v429_v47, %v307_v11 }
 0x255   :  { %v443_v13 = vpop.eup %442 }
 0x256   :  { %v350_v17 = vsel %vm349_vm15, %v332_v15, %v309_v14  ;;  %v304_v19 = vmul.f32 %v443_v13, %v300_v3 }
 0x257   :  { %352 = vst [vmem:[%s610_s5] sm:$0xff] %v350_v17 }
 0x258   :  { %v306_v23 = vsub.f32 2.0, %v304_v19 }
 0x25a   :  { %v308_v25 = vmul.f32 %v443_v13, %v306_v23 }
 0x25c   :  { %v310_v27 = vmul.f32 %v431_v49, %v308_v25 }
 0x25e   :  { %v351_v9 = vsel %vm349_vm15, %v347_v28, %v310_v27 }
 0x25f   :  { %353 = vst [vmem:[%s610_s5 + $0x8] sm:$0xff] %v351_v9 }
 0x260   :  { %358 = vsyncpa [#allocation3], 1 }
 0x261   :  { %359 = vsyncpa [#allocation5], 1 }

</bundles_post_ra>
